<compile_context>
chip_gen: v7x
topology: tpu7x:2x2x1
jax: 0.10.0
libtpu: 0.0.40
codegen_flags: <defaults>
</compile_context>

<pallas_src>
import functools

import jax
import jax.numpy as jnp
from jax.experimental import pallas as pl
from jax.experimental.pallas import tpu as pltpu


def _round_up(x, m):
    return ((x + m - 1) // m) * m


def _tpu_caps():
    """Best-effort (vmem_capacity_bytes, num_tensorcores) query with fallbacks."""
    vmem = None
    cores = None
    try:
        info = pltpu.get_tpu_info()
        v = getattr(info, "vmem_capacity_bytes", None)
        try:
            vmem = int(v)
        except (TypeError, ValueError):
            vmem = None
        for attr in ("num_cores", "core_count", "num_tensorcores", "tensorcore_count"):
            c = getattr(info, attr, None)
            try:
                c = int(c)
            except (TypeError, ValueError):
                c = None
            if c is not None and c > 0:
                cores = c
                break
    except Exception:
        pass
    if vmem is None or vmem <= 0:
        vmem = 64 << 20  # conservative: assume v7x-sized VMEM
    if cores is None:
        # Heuristic: 64 MiB-VMEM parts (v7x) have 2 TensorCores per chip.
        cores = 2 if vmem <= (64 << 20) else 1
    return vmem, cores


def _focal_loss_kernel(x_ref, y_ref, out_ref, *, gamma, alpha, eps, n_rows,
                       tile_rows, tiles_per_split, binary_targets):
    s = pl.program_id(0)   # split (megacore "parallel") axis
    k = pl.program_id(1)   # row-tile index within the split (reduction axis)

    @pl.when(k == 0)
    def _():
        out_ref[...] = jnp.zeros_like(out_ref)

    x = x_ref[...].astype(jnp.float32)   # x_sigmoid (probabilities)
    y = y_ref[...].astype(jnp.float32)   # multi-label binarized targets

    xs_neg = 1.0 - x
    one_m_y = 1.0 - y

    if binary_targets:
        # Opt-in fast path (y guaranteed in {0,1}): fuse the two logs into one.
        pt = x * y + xs_neg * one_m_y
        loss = jnp.log(jnp.maximum(pt, eps))
        if gamma > 0:
            alpha_factor = (1.0 - alpha) + (2.0 * alpha - 1.0) * y
            loss = loss * (alpha_factor * (1.0 - pt) ** gamma)
    else:
        # Default path: exact two-log form of the PyTorch module (soft targets ok).
        los_pos = y * jnp.log(jnp.maximum(x, eps))
        los_neg = one_m_y * jnp.log(jnp.maximum(xs_neg, eps))
        loss = los_pos + los_neg
        if gamma > 0:
            pt = x * y + xs_neg * one_m_y
            alpha_factor = (1.0 - alpha) + (2.0 * alpha - 1.0) * y
            # gamma is a static Python int -> (1-pt)**gamma is VPU multiplies.
            loss = loss * (alpha_factor * (1.0 - pt) ** gamma)

    rows, c = loss.shape

    def accumulate(vals):
        # The reshape only splits the leading (sublane-group) axis, so it is
        # layout-free; the axis-0 sum is pure vreg adds on the VPU.  Accumulate
        # NEGATED partials so the output already carries the final minus sign.
        partial = vals.reshape(rows // 8, 8, c).sum(axis=0)
        out_ref[...] -= partial[None, :, :]

    row_start = (s * tiles_per_split + k) * tile_rows
    fits = row_start + tile_rows <= n_rows

    # Hot path: tile fully in bounds -> no mask at all.
    @pl.when(fits)
    def _():
        accumulate(loss)

    # Tail (or fully out-of-range) tile: zero rows >= n_rows before accumulating.
    @pl.when(jnp.logical_not(fits))
    def _():
        row_ids = row_start + jax.lax.broadcasted_iota(jnp.int32, loss.shape, 0)
        accumulate(jnp.where(row_ids < n_rows, loss, 0.0))


def focal_loss1(x_sigmoid, y, *, gamma=2, alpha=0.25, eps=1e-8,
                binary_targets=False):
    """Pallas implementation of FocalLoss1.forward -> scalar float32 loss."""
    assert x_sigmoid.shape == y.shape and x_sigmoid.ndim == 2
    n, c = x_sigmoid.shape

    # gamma as a static int keeps the power on the VPU (never exp/log).
    if float(gamma).is_integer():
        gamma = int(gamma)

    vmem_capacity, num_cores = _tpu_caps()

    # ---- generation-aware tile sizing ---------------------------------------
    if vmem_capacity >= (128 << 20):          # v5e / v6e: 128 MiB VMEM, 1 TC
        target_block_bytes = 8 << 20          # per-input block
        max_tile_rows = 16384
        vmem_cap = 96 << 20
    else:                                     # v7x: 64 MiB VMEM, 2 TCs
        target_block_bytes = 6 << 20
        max_tile_rows = 8192
        vmem_cap = 48 << 20

    itemsize_x = jnp.dtype(x_sigmoid.dtype).itemsize
    itemsize_y = jnp.dtype(y.dtype).itemsize
    # Row granularity covering sublane packing of the narrowest input dtype
    # (f32 -> 8, bf16 -> 16, int8 -> 32).
    row_granule = 8 * max(1, 4 // max(1, min(itemsize_x, itemsize_y)))

    per_row_bytes = c * max(itemsize_x, itemsize_y)
    tile_rows = (target_block_bytes // per_row_bytes) // row_granule * row_granule
    tile_rows = max(row_granule,
                    min(tile_rows, max_tile_rows, _round_up(n, row_granule)))

    num_tiles = pl.cdiv(n, tile_rows)
    # Megacore split only when the chip actually has 2 TensorCores.
    num_splits = 2 if (num_cores >= 2 and num_tiles >= 2) else 1
    tiles_per_split = pl.cdiv(num_tiles, num_splits)

    # ---- VMEM budget: explicit limit so the large tiles double-buffer -------
    block_bytes = tile_rows * c * (itemsize_x + itemsize_y)
    vmem_limit = int(min(max(2 * block_bytes + (8 << 20), 32 << 20), vmem_cap))

    kernel = functools.partial(
        _focal_loss_kernel, gamma=gamma, alpha=float(alpha), eps=float(eps),
        n_rows=n, tile_rows=tile_rows, tiles_per_split=tiles_per_split,
        binary_targets=bool(binary_targets))

    last_block = num_tiles - 1

    def in_map(s, k):
        # Clamp so an odd tile count under a 2-way split never indexes past the
        # array; the in-kernel row mask zeroes any such duplicated tile.
        blk = s * tiles_per_split + k
        return (jnp.minimum(blk, last_block), 0)

    # TODO(synk): sweep pipeline_mode=pl.Buffered(3) on the input specs if xprof
    # shows exposed DMA at step boundaries on v7x.
    partials = pl.pallas_call(
        kernel,
        out_shape=jax.ShapeDtypeStruct((num_splits, 8, c), jnp.float32),
        grid_spec=pltpu.PrefetchScalarGridSpec(
            num_scalar_prefetch=0,
            grid=(num_splits, tiles_per_split),
            in_specs=[
                pl.BlockSpec((tile_rows, c), in_map),
                pl.BlockSpec((tile_rows, c), in_map),
            ],
            out_specs=pl.BlockSpec((1, 8, c), lambda s, k: (s, 0, 0)),
        ),
        compiler_params=pltpu.CompilerParams(
            dimension_semantics=("parallel", "arbitrary"),
            vmem_limit_bytes=vmem_limit,
        ),
    )(x_sigmoid, y)

    # Collapse the (num_splits, 8, C) negated partial sums to the scalar loss.
    return jnp.sum(partials)


def focal_loss1_ref(x_sigmoid, y, *, gamma=2, alpha=0.25, eps=1e-8):
    """Pure-JAX reference matching the PyTorch module exactly."""
    x = x_sigmoid.astype(jnp.float32)
    y = y.astype(jnp.float32)
    xs_pos = x
    xs_neg = 1.0 - x
    los_pos = y * jnp.log(jnp.maximum(xs_pos, eps))
    los_neg = (1.0 - y) * jnp.log(jnp.maximum(xs_neg, eps))
    loss = los_pos + los_neg
    if gamma > 0:
        pt = xs_pos * y + xs_neg * (1.0 - y)
        alpha_factor = alpha * y + (1.0 - alpha) * (1.0 - y)
        loss = loss * (alpha_factor * (1.0 - pt) ** gamma)
    return -jnp.sum(loss)


if __name__ == "__main__":
    key = jax.random.PRNGKey(0)

    # Test 1: small aligned multi-label problem (16 samples, 128 classes).
    k1, k2 = jax.random.split(key)
    N, C = 16, 128
    logits = jax.random.normal(k1, (N, C), dtype=jnp.float32)
    x_sigmoid = jax.nn.sigmoid(logits)                      # module takes probs
    y = (jax.random.uniform(k2, (N, C)) > 0.7).astype(jnp.float32)

    loss = jax.block_until_ready(focal_loss1(x_sigmoid, y))
    ref = focal_loss1_ref(x_sigmoid, y)
    assert jnp.allclose(loss, ref, rtol=1e-5, atol=1e-4), (loss, ref)

    # Test 2: unaligned shape (no wrapper padding; in-kernel row-tail mask,
    # full-extent C block dim).
    k3, k4 = jax.random.split(k2)
    N2, C2 = 37, 200
    logits2 = jax.random.normal(k3, (N2, C2), dtype=jnp.float32)
    x2 = jax.nn.sigmoid(logits2)
    y2 = (jax.random.uniform(k4, (N2, C2)) > 0.7).astype(jnp.float32)

    loss2 = jax.block_until_ready(focal_loss1(x2, y2))
    ref2 = focal_loss1_ref(x2, y2)
    assert jnp.allclose(loss2, ref2, rtol=1e-5, atol=1e-4), (loss2, ref2)

    # Test 3: opt-in binary-target fast path (same result for y in {0,1}).
    loss3 = jax.block_until_ready(focal_loss1(x_sigmoid, y, binary_targets=True))
    assert jnp.allclose(loss3, ref, rtol=1e-5, atol=1e-4), (loss3, ref)

    # Test 4: narrow-dtype labels (int8) kept narrow end-to-end; only the
    # in-kernel upcast to f32 runs (bandwidth saver on v5e/v6e).
    k5, k6 = jax.random.split(k4)
    N4, C4 = 64, 128
    logits4 = jax.random.normal(k5, (N4, C4), dtype=jnp.float32)
    x4 = jax.nn.sigmoid(logits4)
    y4_i8 = (jax.random.uniform(k6, (N4, C4)) > 0.7).astype(jnp.int8)

    loss4 = jax.block_until_ready(focal_loss1(x4, y4_i8))
    ref4 = focal_loss1_ref(x4, y4_i8.astype(jnp.float32))
    assert jnp.allclose(loss4, ref4, rtol=1e-5, atol=1e-4), (loss4, ref4)

    print("KERNEL_OK")
</pallas_src>

<mosaic_0001>
module attributes {stable_mosaic.version = 11 : i64} {
  func.func @_focal_loss_kernel(%arg0: i32, %arg1: i32, %arg2: memref<16x128xf32, #tpu.memory_space<vmem>>, %arg3: memref<16x128xf32, #tpu.memory_space<vmem>>, %arg4: memref<1x8x128xf32, #tpu.memory_space<vmem>>) attributes {dimension_semantics = [#tpu.dimension_semantics<parallel>, #tpu.dimension_semantics<arbitrary>], iteration_bounds = array<i64: 1, 1>, scalar_prefetch = 0 : i64, scratch_operands = 0 : i64, tpu.core_type = #tpu.core_type<tc>, window_params = [{transform_indices = @transform_0, window_bounds = array<i64: 16, 128>}, {transform_indices = @transform_1, window_bounds = array<i64: 16, 128>}, {transform_indices = @transform_2, window_bounds = array<i64: 1, 8, 128>}]} {
    %c0_i32 = arith.constant 0 : i32
    %0 = arith.cmpi eq, %arg1, %c0_i32 : i32
    %1 = arith.extui %0 : i1 to i32
    %c0_i32_0 = arith.constant 0 : i32
    %2 = arith.cmpi ne, %1, %c0_i32_0 : i32
    scf.if %2 {
      %cst_14 = arith.constant 0.000000e+00 : f32
      %40 = vector.broadcast %cst_14 : f32 to vector<1x8x128xf32>
      %c0_15 = arith.constant 0 : index
      %c0_16 = arith.constant 0 : index
      %c0_17 = arith.constant 0 : index
      %41 = vector.load %arg4[%c0_15, %c0_16, %c0_17] : memref<1x8x128xf32, #tpu.memory_space<vmem>>, vector<1x8x128xf32>
      tpu.vector_store %arg4[%c0_15, %c0_16, %c0_17], %40 {strides = array<i32>} : memref<1x8x128xf32, #tpu.memory_space<vmem>>, vector<1x8x128xf32>,
    } else {
    }
    %c0 = arith.constant 0 : index
    %c0_1 = arith.constant 0 : index
    %3 = vector.load %arg2[%c0, %c0_1] : memref<16x128xf32, #tpu.memory_space<vmem>>, vector<16x128xf32>
    %c0_2 = arith.constant 0 : index
    %c0_3 = arith.constant 0 : index
    %4 = vector.load %arg3[%c0_2, %c0_3] : memref<16x128xf32, #tpu.memory_space<vmem>>, vector<16x128xf32>
    %cst = arith.constant 1.000000e+00 : f32
    %5 = vector.broadcast %cst : f32 to vector<16x128xf32>
    %6 = arith.subf %5, %3 : vector<16x128xf32>
    %cst_4 = arith.constant 1.000000e+00 : f32
    %7 = vector.broadcast %cst_4 : f32 to vector<16x128xf32>
    %8 = arith.subf %7, %4 : vector<16x128xf32>
    %cst_5 = arith.constant 9.99999993E-9 : f32
    %9 = vector.broadcast %cst_5 : f32 to vector<16x128xf32>
    %10 = arith.maximumf %3, %9 : vector<16x128xf32>
    %11 = math.log %10 : vector<16x128xf32>
    %12 = arith.mulf %4, %11 : vector<16x128xf32>
    %cst_6 = arith.constant 9.99999993E-9 : f32
    %13 = vector.broadcast %cst_6 : f32 to vector<16x128xf32>
    %14 = arith.maximumf %6, %13 : vector<16x128xf32>
    %15 = math.log %14 : vector<16x128xf32>
    %16 = arith.mulf %8, %15 : vector<16x128xf32>
    %17 = arith.addf %12, %16 : vector<16x128xf32>
    %18 = arith.mulf %3, %4 : vector<16x128xf32>
    %19 = arith.mulf %6, %8 : vector<16x128xf32>
    %20 = arith.addf %18, %19 : vector<16x128xf32>
    %cst_7 = arith.constant -5.000000e-01 : f32
    %21 = vector.broadcast %cst_7 : f32 to vector<16x128xf32>
    %22 = arith.mulf %21, %4 : vector<16x128xf32>
    %cst_8 = arith.constant 7.500000e-01 : f32
    %23 = vector.broadcast %cst_8 : f32 to vector<16x128xf32>
    %24 = arith.addf %23, %22 : vector<16x128xf32>
    %cst_9 = arith.constant 1.000000e+00 : f32
    %25 = vector.broadcast %cst_9 : f32 to vector<16x128xf32>
    %26 = arith.subf %25, %20 : vector<16x128xf32>
    %27 = arith.mulf %26, %26 : vector<16x128xf32>
    %28 = arith.mulf %24, %27 : vector<16x128xf32>
    %29 = arith.mulf %17, %28 : vector<16x128xf32>
    %c1_i32 = arith.constant 1 : i32
    %30 = arith.muli %arg0, %c1_i32 : i32
    %31 = arith.addi %30, %arg1 : i32
    %c16_i32 = arith.constant 16 : i32
    %32 = arith.muli %31, %c16_i32 : i32
    %c16_i32_10 = arith.constant 16 : i32
    %33 = arith.addi %32, %c16_i32_10 : i32
    %c16_i32_11 = arith.constant 16 : i32
    %34 = arith.cmpi sle, %33, %c16_i32_11 : i32
    %35 = arith.extui %34 : i1 to i32
    %c0_i32_12 = arith.constant 0 : i32
    %36 = arith.cmpi ne, %35, %c0_i32_12 : i32
    scf.if %36 {
      %40 = vector.shape_cast %29 : vector<16x128xf32> to vector<2x8x128xf32>
      %cst_14 = arith.constant dense<0.000000e+00> : vector<8x128xf32>
      %41 = vector.multi_reduction <add>, %40, %cst_14 [0] : vector<2x8x128xf32> to vector<8x128xf32>
      %c0_15 = arith.constant 0 : index
      %c0_16 = arith.constant 0 : index
      %c0_17 = arith.constant 0 : index
      %42 = vector.load %arg4[%c0_15, %c0_16, %c0_17] : memref<1x8x128xf32, #tpu.memory_space<vmem>>, vector<1x8x128xf32>
      %43 = vector.shape_cast %41 : vector<8x128xf32> to vector<1x8x128xf32>
      %44 = arith.subf %42, %43 : vector<1x8x128xf32>
      %c0_18 = arith.constant 0 : index
      %c0_19 = arith.constant 0 : index
      %c0_20 = arith.constant 0 : index
      %45 = vector.load %arg4[%c0_18, %c0_19, %c0_20] : memref<1x8x128xf32, #tpu.memory_space<vmem>>, vector<1x8x128xf32>
      tpu.vector_store %arg4[%c0_18, %c0_19, %c0_20], %44 {strides = array<i32>} : memref<1x8x128xf32, #tpu.memory_space<vmem>>, vector<1x8x128xf32>,
    } else {
    }
    %true = arith.constant true
    %37 = arith.xori %34, %true : i1
    %38 = arith.extui %37 : i1 to i32
    %c0_i32_13 = arith.constant 0 : i32
    %39 = arith.cmpi ne, %38, %c0_i32_13 : i32
    scf.if %39 {
      %40 = tpu.iota {dimensions = array<i32: 0>} : vector<16x128xi32>
      %41 = vector.broadcast %32 : i32 to vector<16x128xi32>
      %42 = arith.addi %41, %40 : vector<16x128xi32>
      %c16_i32_14 = arith.constant 16 : i32
      %43 = vector.broadcast %c16_i32_14 : i32 to vector<16x128xi32>
      %44 = arith.cmpi slt, %42, %43 : vector<16x128xi32>
      %cst_15 = arith.constant 0.000000e+00 : f32
      %45 = vector.broadcast %cst_15 : f32 to vector<16x128xf32>
      %46 = arith.select %44, %29, %45 : vector<16x128xi1>, vector<16x128xf32>
      %47 = vector.shape_cast %46 : vector<16x128xf32> to vector<2x8x128xf32>
      %cst_16 = arith.constant dense<0.000000e+00> : vector<8x128xf32>
      %48 = vector.multi_reduction <add>, %47, %cst_16 [0] : vector<2x8x128xf32> to vector<8x128xf32>
      %c0_17 = arith.constant 0 : index
      %c0_18 = arith.constant 0 : index
      %c0_19 = arith.constant 0 : index
      %49 = vector.load %arg4[%c0_17, %c0_18, %c0_19] : memref<1x8x128xf32, #tpu.memory_space<vmem>>, vector<1x8x128xf32>
      %50 = vector.shape_cast %48 : vector<8x128xf32> to vector<1x8x128xf32>
      %51 = arith.subf %49, %50 : vector<1x8x128xf32>
      %c0_20 = arith.constant 0 : index
      %c0_21 = arith.constant 0 : index
      %c0_22 = arith.constant 0 : index
      %52 = vector.load %arg4[%c0_20, %c0_21, %c0_22] : memref<1x8x128xf32, #tpu.memory_space<vmem>>, vector<1x8x128xf32>
      tpu.vector_store %arg4[%c0_20, %c0_21, %c0_22], %51 {strides = array<i32>} : memref<1x8x128xf32, #tpu.memory_space<vmem>>, vector<1x8x128xf32>,
    } else {
    }
    return
  }
  func.func @transform_0(%arg0: i32, %arg1: i32) -> (i32, i32) {
    %c1_i32 = arith.constant 1 : i32
    %0 = arith.muli %arg0, %c1_i32 : i32
    %1 = arith.addi %0, %arg1 : i32
    %c0_i32 = arith.constant 0 : i32
    %2 = arith.minsi %1, %c0_i32 : i32
    %c0_i32_0 = arith.constant 0 : i32
    %c0_i32_1 = arith.constant 0 : i32
    return %2, %c0_i32_0 : i32, i32
  }
  func.func @transform_1(%arg0: i32, %arg1: i32) -> (i32, i32) {
    %c1_i32 = arith.constant 1 : i32
    %0 = arith.muli %arg0, %c1_i32 : i32
    %1 = arith.addi %0, %arg1 : i32
    %c0_i32 = arith.constant 0 : i32
    %2 = arith.minsi %1, %c0_i32 : i32
    %c0_i32_0 = arith.constant 0 : i32
    %c0_i32_1 = arith.constant 0 : i32
    return %2, %c0_i32_0 : i32, i32
  }
  func.func @transform_2(%arg0: i32, %arg1: i32) -> (i32, i32, i32) {
    %c0_i32 = arith.constant 0 : i32
    %c0_i32_0 = arith.constant 0 : i32
    %c0_i32_1 = arith.constant 0 : i32
    return %arg0, %c0_i32, %c0_i32_0 : i32, i32, i32
  }
}

</mosaic_0001>

<bundles_post_ra>
// kernel: tpu_custom_call.1
= control target key start
LH: loop header
LB: loop body
LE: loop exit
PB: predicated region body
PF: predicated region fallthrough
CT: control target
= control target key end

     0   :  { %7 = vsyncpa [#allocation3], 0  ;;  %s300_s0 = inlined_call_operand.hbm [shape: f32[16,128], index: 0, kind: input, shape index: {}]   ;;  %s301_s1 = inlined_call_operand.hbm [shape: f32[16,128], index: 1, kind: input, shape index: {}]   ;;  %s302_s2 = inlined_call_operand.hbm [shape: f32[1,8,128], index: 2, kind: output, shape index: {}]  }
   0x1   :  { %8 = vsyncpa [#allocation6], 0 }
   0x2   :  { %9 = vsyncpa [#allocation4], 0  ;;  %s244_s9 = smov [#allocation2]   ;;  %s172_s13 = scalar_lea.hbm %s300_s0, 256 }
   0x3   :  { %s21_s10 = sshll.u32 %s244_s9, 4  ;;  %p173_p0 = scmp.ne.s32.totalorder %s300_s0, %s172_s13  ;;  %s22_s10 = int_to_ptr.vmem [resolvable:$true] %s21_s10 }
   0x4   :  { %p176_p1 = scmp.lt.u32.totalorder %s172_s13, %s300_s0 }
   0x6   :  { %p178_p2 = pnand %p176_p1, %p173_p0 }
   0x8   :  { %181 = shalt.err (!%p178_p2)
}
   0x9   :  { %s182_s18 = scalar_lea.vmem %s22_s10, 256  ;;  %p187_p4 = scmp.lt.s32.totalorder %s22_s10, %s22_s10 }
   0xa   :  { %p183_p3 = scmp.ne.s32.totalorder %s22_s10, %s182_s18  ;;  %p188_p5 = scmp.lt.s32.totalorder %s182_s18, %s182_s18 }
   0xc   :  { %p189_p6 = por %p188_p5, %p187_p4 }
   0xe   :  { %p190_p7 = pnand %p189_p6, %p183_p3 }
  0x10   :  { %193 = shalt.err (!%p190_p7)
}
  0x11   :  { %s245_s19 = smov 128   ;;  %s246_s20 = smov 8  }
  0x12   :  { %27 = dma.hbm_to_vmem [thread:$0]  %s300_s0, 256, %s22_s10, [#allocation3], %s245_s19, %s245_s19, %s246_s20  }
  0x13   :  { %s247_s23 = smov [#allocation5]   ;;  %s194_s27 = scalar_lea.hbm %s301_s1, 256 }
  0x14   :  { %s39_s24 = sshll.u32 %s247_s23, 4  ;;  %p195_p8 = scmp.ne.s32.totalorder %s301_s1, %s194_s27  ;;  %s40_s24 = int_to_ptr.vmem [resolvable:$true] %s39_s24 }
  0x15   :  { %p198_p9 = scmp.lt.u32.totalorder %s194_s27, %s301_s1 }
  0x17   :  { %p200_p10 = pnand %p198_p9, %p195_p8 }
  0x19   :  { %203 = shalt.err (!%p200_p10)
}
  0x1a   :  { %s204_s4 = scalar_lea.vmem %s40_s24, 256  ;;  %p209_p12 = scmp.lt.s32.totalorder %s40_s24, %s40_s24 }
  0x1b   :  { %p205_p11 = scmp.ne.s32.totalorder %s40_s24, %s204_s4  ;;  %p210_p13 = scmp.lt.s32.totalorder %s204_s4, %s204_s4 }
  0x1d   :  { %p211_p0 = por %p210_p13, %p209_p12 }
  0x1f   :  { %p212_p1 = pnand %p211_p0, %p205_p11 }
  0x21   :  { %215 = shalt.err (!%p212_p1)
}
  0x22   :  { %45 = dma.hbm_to_vmem [thread:$0]  %s301_s1, 256, %s40_s24, [#allocation6], %s245_s19, %s245_s19, %s246_s20  }
  0x23   :  { %238 = dma.done.wait [#allocation3], 256  }
  0x24   :  { %239 = vsyncadd [#allocation3], 4294967040 }
  0x25   :  { %240 = dma.done.wait [#allocation6], 256  }
  0x26   :  { %241 = vsyncadd [#allocation6], 4294967040  ;;  %v65_v0 = vld [vmem:[#allocation2] sm:$0xff]  ;;  %v66_v1 = vld [vmem:[#allocation2 + $0x8] sm:$0xff]  ;;  %s248_s1 = smov [#allocation7]  }
  0x27   :  { %v67_v2 = vld [vmem:[#allocation5] sm:$0xff]  ;;  %v68_v3 = vld [vmem:[#allocation5 + $0x8] sm:$0xff]  ;;  %v69_v4 = vsub.f32 1.0, %v65_v0  ;;  %v70_v5 = vsub.f32 1.0, %v66_v1  ;;  %v73_v7 = vmax.f32 %v65_v0, 1e-08 }
  0x28   :  { %v71_v6 = vsub.f32 1.0, %v67_v2  ;;  %v72_v8 = vsub.f32 1.0, %v68_v3  ;;  %v74_v9 = vmax.f32 %v66_v1, 1e-08  ;;  %v91_v10 = vmul.f32 %v67_v2, %v65_v0  ;;  %s144_s6 = sshll.u32 %s248_s1, 4  ;;  %s145_s6 = int_to_ptr.vmem [resolvable:$true] %s144_s6 }
  0x29   :  { %v92_v11 = vmul.f32 %v68_v3, %v66_v1  ;;  %164 = vlog2.f32 %v73_v7  ;;  %v81_v12 = vmax.f32 %v69_v4, 1e-08  ;;  %v82_v13 = vmax.f32 %v70_v5, 1e-08  ;;  %s216_s7 = scalar_lea.vmem %s145_s6, 128  ;;  %p221_p3 = scmp.lt.s32.totalorder %s145_s6, %s145_s6 }
  0x2a   :  { %v93_v14 = vmul.f32 %v71_v6, %v69_v4  ;;  %166 = vlog2.f32 %v74_v9  ;;  %v94_v15 = vmul.f32 %v72_v8, %v70_v5  ;;  %v97_v18 = vmul.f32 -0.5, %v67_v2  ;;  %p217_p2 = scmp.ne.s32.totalorder %s145_s6, %s216_s7  ;;  %p222_p4 = scmp.lt.s32.totalorder %s216_s7, %s216_s7 }
  0x2b   :  { %168 = vlog2.f32 %v81_v12  ;;  %v98_v20 = vmul.f32 -0.5, %v68_v3 }
  0x2c   :  { %170 = vlog2.f32 %v82_v13  ;;  %v95_v16 = vadd.f32 %v93_v14, %v91_v10  ;;  %v96_v17 = vadd.f32 %v94_v15, %v92_v11  ;;  %v99_v25 = vadd.f32 0.75, %v97_v18  ;;  %p223_p5 = por %p222_p4, %p221_p3 }
  0x2d   :  { %v100_v29 = vadd.f32 0.75, %v98_v20 }
  0x2e   :  { %v101_v19 = vsub.f32 1.0, %v95_v16  ;;  %v102_v21 = vsub.f32 1.0, %v96_v17  ;;  %p224_p6 = pnand %p223_p5, %p217_p2 }
  0x30   :  { %v103_v26 = vmul.f32 %v101_v19, %v101_v19  ;;  %v104_v30 = vmul.f32 %v102_v21, %v102_v21 }
  0x32   :  { %v105_v37 = vmul.f32 %v103_v26, %v99_v25  ;;  %v106_v39 = vmul.f32 %v104_v30, %v100_v29 }
  0x33   :  { %v165_v22 = vpop.eup %164 }
  0x34   :  { %v167_v23 = vpop.eup %166  ;;  %v76_v24 = vmul.f32 0.6931472, %v165_v22 }
  0x35   :  { %v169_v27 = vpop.eup %168  ;;  %v78_v28 = vmul.f32 0.6931472, %v167_v23 }
  0x36   :  { %v171_v31 = vpop.eup %170  ;;  %v79_v32 = vmul.f32 %v76_v24, %v67_v2  ;;  %v84_v33 = vmul.f32 0.6931472, %v169_v27 }
  0x37   :  { %v80_v34 = vmul.f32 %v78_v28, %v68_v3  ;;  %v86_v35 = vmul.f32 0.6931472, %v171_v31 }
  0x38   :  { %v87_v36 = vmul.f32 %v84_v33, %v71_v6 }
  0x39   :  { %v88_v38 = vmul.f32 %v86_v35, %v72_v8 }
  0x3a   :  { %v89_v40 = vadd.f32 %v87_v36, %v79_v32 }
  0x3b   :  { %v90_v41 = vadd.f32 %v88_v38, %v80_v34 }
  0x3c   :  { %v107_v42 = vmul.f32 %v105_v37, %v89_v40 }
  0x3d   :  { %v108_v43 = vmul.f32 %v106_v39, %v90_v41 }
  0x3f   :  { %v116_v44 = vadd.f32 %v108_v43, %v107_v42 }
  0x41   :  { %v118_v45 = vsub.f32 0.0, %v116_v44 }
  0x43   :  { %119 = vst [vmem:[#allocation7] sm:$0xff] %v118_v45 }
  0x44   :  { %227 = shalt.err (!%p224_p6)
}
  0x45   :  { %s228_s10 = scalar_lea.hbm %s302_s2, 128 }
  0x46   :  { %p229_p7 = scmp.ne.s32.totalorder %s302_s2, %s228_s10  ;;  %p232_p8 = scmp.lt.u32.totalorder %s228_s10, %s302_s2 }
  0x48   :  { %p234_p9 = pnand %p232_p8, %p229_p7 }
  0x4a   :  { %237 = shalt.err (!%p234_p9)
}
  0x4b   :  { %147 = dma.vmem_to_hbm [thread:$0]  %s145_s6, 128, %s302_s2, [#allocation4]  }
  0x4c   :  { %242 = dma.done.wait [#allocation4], 128  }
  0x4d   :  { %243 = vsyncadd [#allocation4], 4294967168 }
  0x4e   :  { %151 = vsyncpa [#allocation3], 1 }
  0x4f   :  { %152 = vsyncpa [#allocation6], 1 }
  0x50   :  { %153 = vsyncpa [#allocation4], 1 }

</bundles_post_ra>
